<compile_context>
chip_gen: v7x
topology: tpu7x:2x2x1
jax: 0.10.0
libtpu: 0.0.40
codegen_flags: <defaults>
</compile_context>

<pallas_src>
import math

import jax
import jax.numpy as jnp
from jax.experimental import pallas as pl
from jax.experimental.pallas import tpu as pltpu


# ---------------- parameter construction (mirrors Filter.__init__) -----------
def generate_filter(start, end, size):
    return [[0.0 if i + j > end or i + j <= start else 1.0 for j in range(size)]
            for i in range(size)]


def make_filter_params(size, band_start, band_end, use_learnable=True, norm=False,
                       key=jax.random.PRNGKey(0)):
    base = jnp.asarray(generate_filter(band_start, band_end, size), dtype=jnp.float32)
    params = {"base": base}
    if use_learnable:
        # torch.randn(size,size).normal_(0.0, 0.1) -> deterministic JAX normal * 0.1
        params["learnable"] = 0.1 * jax.random.normal(key, (size, size), dtype=jnp.float32)
    if norm:
        params["ft_num"] = float(jnp.sum(base))
    return params


# ---------------- Pallas kernel ----------------------------------------------
def _filter_kernel(x_ref, filt_ref, o_ref):
    # x_ref: (tb, lane) tile of flattened image planes (lane-dense last dim).
    # filt_ref: (1, lane) combined filter, grid-resident (same block every step).
    # Single broadcast multiply per step; pure VPU work, memory-bound overall.
    o_ref[...] = (x_ref[...] * filt_ref[...]).astype(o_ref.dtype)


def _round_up(x, m):
    return (x + m - 1) // m * m


def _vmem_limit_bytes():
    # Generation-aware scoped-VMEM limit:
    #   v5e/v6e: 128 MiB physical  -> raise scoped limit to 64 MiB
    #   v7x:      64 MiB physical  -> stay at 48 MiB (3/4 of physical)
    try:
        cap = pltpu.get_tpu_info().vmem_capacity_bytes
        return int(min(cap * 3 // 4, 64 * 1024 * 1024))
    except Exception:
        return 48 * 1024 * 1024


def filter_forward(x, params, *, use_learnable=True, norm=False):
    """x: (N, C, S, S) -> (N, C, S, S); y = x * (base + norm_sigma(learnable)) [/ ft_num]."""
    N, C, S, _ = x.shape
    B = N * C
    P = S * S

    # --- precompute the combined filter ONCE in the wrapper -------------------
    filt = params["base"]
    if use_learnable:
        filt = filt + (2.0 * jax.nn.sigmoid(params["learnable"]) - 1.0)
    if norm:
        filt = filt / params["ft_num"]          # fold 1/ft_num into the filter
    filt_flat = filt.reshape(-1).astype(x.dtype)

    # --- lane-dense layout: fold k planes into the lane axis when S*S is not a
    #     multiple of 128 (avoids masked vst partial stores for small/odd S) ---
    k = 1
    if P % 128 != 0:
        k_needed = math.lcm(P, 128) // P
        if B % k_needed == 0:
            k = k_needed
    rows = B // k
    lane = k * P
    x2 = x.reshape(rows, lane)
    if k > 1:
        filt2 = jnp.tile(filt_flat, (k,)).reshape(1, lane)
    else:
        filt2 = filt_flat.reshape(1, lane)

    # --- dtype-aware sublane alignment (8 for f32, 16 for bf16, 32 for int8) --
    itemsize = x2.dtype.itemsize
    sub_align = max(8, 32 // itemsize)

    # --- tile sizing: ~8 MiB per buffer; live VMEM ~= 4 * tile (double-buffered
    #     input + output) plus the tiny resident filter row ---------------------
    vmem_limit = _vmem_limit_bytes()
    tile_bytes = min(8 * 1024 * 1024, (vmem_limit - (1 << 20)) // 4)
    bytes_per_row = lane * itemsize
    tb = max(sub_align, (tile_bytes // bytes_per_row) // sub_align * sub_align)
    # Guarantee >= 2 grid steps when the input allows it, so v7x's two
    # TensorCores both get work from the ("parallel",) axis.  Harmless on
    # single-TC v5e/v6e (adds at most one ~0.35us step).
    if rows >= 2 * sub_align:
        tb = min(tb, _round_up(pl.cdiv(rows, 2), sub_align))
    tb = min(tb, _round_up(rows, sub_align))

    # No padding / trailing slice: let Pallas mask the partial last block.
    grid = (pl.cdiv(rows, tb),)

    out = pl.pallas_call(
        _filter_kernel,
        out_shape=jax.ShapeDtypeStruct((rows, lane), x.dtype),
        grid_spec=pltpu.PrefetchScalarGridSpec(
            num_scalar_prefetch=0,
            grid=grid,
            in_specs=[
                pl.BlockSpec((tb, lane), lambda b: (b, 0)),   # many planes per step
                pl.BlockSpec((1, lane), lambda b: (0, 0)),    # resident combined filter
            ],
            out_specs=pl.BlockSpec((tb, lane), lambda b: (b, 0)),
        ),
        compiler_params=pltpu.CompilerParams(
            dimension_semantics=("parallel",),
            vmem_limit_bytes=vmem_limit,
        ),
    )(x2, filt2)

    return out.reshape(N, C, S, S)


# ---------------- reference (pure JAX) for sanity -----------------------------
def filter_reference(x, params, *, use_learnable=True, norm=False):
    filt = params["base"]
    if use_learnable:
        filt = filt + (2.0 * jax.nn.sigmoid(params["learnable"]) - 1.0)
    y = x * filt
    if norm:
        y = y / params["ft_num"]
    return y


if __name__ == "__main__":
    # Small shapes consistent with the module: NCHW input, square spatial = size.
    N, C, size = 2, 4, 16
    band_start, band_end = 0, size  # keep low/mid frequency band
    use_learnable, norm = True, True

    key = jax.random.PRNGKey(0)
    k_x, k_w, k_x2 = jax.random.split(key, 3)

    params = make_filter_params(size, band_start, band_end,
                                use_learnable=use_learnable, norm=norm, key=k_w)
    x = jax.random.normal(k_x, (N, C, size, size), dtype=jnp.float32)

    y = filter_forward(x, params, use_learnable=use_learnable, norm=norm)
    jax.block_until_ready(y)

    y_ref = filter_reference(x, params, use_learnable=use_learnable, norm=norm)
    assert y.shape == (N, C, size, size)
    assert jnp.allclose(y, y_ref, atol=1e-5, rtol=1e-5), "mismatch vs reference"

    # Second sanity check: non-divisible batch (exercises masked partial block,
    # no pad/slice round-trip) at the same spatial size.
    x_b = jax.random.normal(k_x2, (3, 5, size, size), dtype=jnp.float32)
    y_b = filter_forward(x_b, params, use_learnable=use_learnable, norm=norm)
    jax.block_until_ready(y_b)
    y_b_ref = filter_reference(x_b, params, use_learnable=use_learnable, norm=norm)
    assert jnp.allclose(y_b, y_b_ref, atol=1e-5, rtol=1e-5), "mismatch vs reference (partial block)"

    print("KERNEL_OK")
</pallas_src>

<mosaic_0001>
module attributes {stable_mosaic.version = 11 : i64} {
  func.func @_filter_kernel(%arg0: i32, %arg1: memref<8x256xf32, #tpu.memory_space<vmem>>, %arg2: memref<1x256xf32, #tpu.memory_space<vmem>>, %arg3: memref<8x256xf32, #tpu.memory_space<vmem>>) attributes {dimension_semantics = [#tpu.dimension_semantics<parallel>], iteration_bounds = array<i64: 1>, scalar_prefetch = 0 : i64, scratch_operands = 0 : i64, tpu.core_type = #tpu.core_type<tc>, window_params = [{transform_indices = @transform_0, window_bounds = array<i64: 8, 256>}, {pipeline_mode = #tpu.pipeline_mode<synchronous>, transform_indices = @transform_1, window_bounds = array<i64: 1, 256>}, {transform_indices = @transform_2, window_bounds = array<i64: 8, 256>}]} {
    %c0 = arith.constant 0 : index
    %c0_0 = arith.constant 0 : index
    %0 = vector.load %arg1[%c0, %c0_0] : memref<8x256xf32, #tpu.memory_space<vmem>>, vector<8x256xf32>
    %c0_1 = arith.constant 0 : index
    %c0_2 = arith.constant 0 : index
    %1 = vector.load %arg2[%c0_1, %c0_2] : memref<1x256xf32, #tpu.memory_space<vmem>>, vector<1x256xf32>
    %2 = vector.broadcast %1 : vector<1x256xf32> to vector<8x256xf32>
    %3 = arith.mulf %0, %2 : vector<8x256xf32>
    %c0_3 = arith.constant 0 : index
    %c0_4 = arith.constant 0 : index
    %4 = vector.load %arg3[%c0_3, %c0_4] : memref<8x256xf32, #tpu.memory_space<vmem>>, vector<8x256xf32>
    tpu.vector_store %arg3[%c0_3, %c0_4], %3 {strides = array<i32>} : memref<8x256xf32, #tpu.memory_space<vmem>>, vector<8x256xf32>,
    return
  }
  func.func @transform_0(%arg0: i32) -> (i32, i32) {
    %c0_i32 = arith.constant 0 : i32
    %c0_i32_0 = arith.constant 0 : i32
    return %arg0, %c0_i32 : i32, i32
  }
  func.func @transform_1(%arg0: i32) -> (i32, i32) {
    %c0_i32 = arith.constant 0 : i32
    %c0_i32_0 = arith.constant 0 : i32
    %c0_i32_1 = arith.constant 0 : i32
    return %c0_i32, %c0_i32_0 : i32, i32
  }
  func.func @transform_2(%arg0: i32) -> (i32, i32) {
    %c0_i32 = arith.constant 0 : i32
    %c0_i32_0 = arith.constant 0 : i32
    return %arg0, %c0_i32 : i32, i32
  }
}

</mosaic_0001>

<bundles_post_ra>
// kernel: tpu_custom_call.1
= control target key start
LH: loop header
LB: loop body
LE: loop exit
PB: predicated region body
PF: predicated region fallthrough
CT: control target
= control target key end

     0   :  { %7 = vsyncpa [#allocation3], 0  ;;  %s151_s0 = inlined_call_operand.hbm [shape: f32[8,256], index: 0, kind: input, shape index: {}]   ;;  %s152_s1 = inlined_call_operand.vmem [shape: f32[1,256], index: 1, kind: input, shape index: {}]   ;;  %s153_s2 = inlined_call_operand.hbm [shape: f32[8,256], index: 2, kind: output, shape index: {}]  }
   0x1   :  { %8 = vsyncpa [#allocation4], 0  ;;  %s107_s9 = smov [#allocation2]   ;;  %s59_s13 = scalar_lea.hbm %s151_s0, 256 }
   0x2   :  { %s15_s10 = sshll.u32 %s107_s9, 4  ;;  %p60_p0 = scmp.ne.s32.totalorder %s151_s0, %s59_s13  ;;  %s16_s10 = int_to_ptr.vmem [resolvable:$true] %s15_s10 }
   0x3   :  { %p63_p1 = scmp.lt.u32.totalorder %s59_s13, %s151_s0 }
   0x5   :  { %p65_p2 = pnand %p63_p1, %p60_p0 }
   0x7   :  { %68 = shalt.err (!%p65_p2)
}
   0x8   :  { %s69_s18 = scalar_lea.vmem %s16_s10, 256  ;;  %p74_p4 = scmp.lt.s32.totalorder %s16_s10, %s16_s10 }
   0x9   :  { %p70_p3 = scmp.ne.s32.totalorder %s16_s10, %s69_s18  ;;  %p75_p5 = scmp.lt.s32.totalorder %s69_s18, %s69_s18 }
   0xb   :  { %p76_p6 = por %p75_p5, %p74_p4 }
   0xd   :  { %p77_p7 = pnand %p76_p6, %p70_p3 }
   0xf   :  { %80 = shalt.err (!%p77_p7)
}
  0x10   :  { %18 = dma.hbm_to_vmem [thread:$0]  %s151_s0, 256, %s16_s10, [#allocation3]  }
  0x11   :  { %103 = dma.done.wait [#allocation3], 256  }
  0x12   :  { %104 = vsyncadd [#allocation3], 4294967040  ;;  %v28_v0 = vlaneseq  ;;  %v24_v4 = vld [vmem:[#allocation2] sm:$0xff]  ;;  %v25_v6 = vld [vmem:[#allocation2 + $0x8] sm:$0xff]  ;;  %s108_s23 = smov [#allocation5]  }
  0x13   :  { %v26_v5 = vld [vmem:[%s152_s1] sm:$0x3]  ;;  %s48_s24 = sshll.u32 %s108_s23, 4  ;;  %s49_s24 = int_to_ptr.vmem [resolvable:$true] %s48_s24 }
  0x14   :  { %v29_v1 = vshrl.u32 %v28_v0, 7  ;;  %s81_s0 = scalar_lea.vmem %s49_s24, 256  ;;  %p86_p9 = scmp.lt.s32.totalorder %s49_s24, %s49_s24 }
  0x15   :  { %p82_p8 = scmp.ne.s32.totalorder %s49_s24, %s81_s0  ;;  %p87_p10 = scmp.lt.s32.totalorder %s81_s0, %s81_s0 }
  0x16   :  { %v30_v2 = vsub.s32 0, %v29_v1  ;;  %v34_v3 = vsub.s32 1, %v29_v1 }
  0x17   :  { %p88_p11 = por %p87_p10, %p86_p9 }
  0x18   :  { %v31_v7 = vrot.slane %v26_v5, %v30_v2  ;;  %v35_v8 = vrot.slane %v26_v5, %v34_v3 }
  0x19   :  { %p89_p12 = pnand %p88_p11, %p82_p8 }
  0x1a   :  { %v38_v9 = vmul.f32 %v31_v7, %v24_v4  ;;  %v39_v10 = vmul.f32 %v35_v8, %v25_v6 }
  0x1c   :  { %40 = vst [vmem:[#allocation5] sm:$0xff] %v38_v9  ;;  %41 = vst [vmem:[#allocation5 + $0x8] sm:$0xff] %v39_v10 }
  0x1d   :  { %92 = shalt.err (!%p89_p12)
}
  0x1e   :  { %s93_s1 = scalar_lea.hbm %s153_s2, 256 }
  0x1f   :  { %p94_p13 = scmp.ne.s32.totalorder %s153_s2, %s93_s1  ;;  %p97_p0 = scmp.lt.u32.totalorder %s93_s1, %s153_s2 }
  0x21   :  { %p99_p1 = pnand %p97_p0, %p94_p13 }
  0x23   :  { %102 = shalt.err (!%p99_p1)
}
  0x24   :  { %51 = dma.vmem_to_hbm [thread:$0]  %s49_s24, 256, %s153_s2, [#allocation4]  }
  0x25   :  { %105 = dma.done.wait [#allocation4], 256  }
  0x26   :  { %106 = vsyncadd [#allocation4], 4294967040 }
  0x27   :  { %55 = vsyncpa [#allocation3], 1 }
  0x28   :  { %56 = vsyncpa [#allocation4], 1 }

</bundles_post_ra>
